<compile_context>
chip_gen: v5e
topology: v5e:2x2
jax: 0.10.0
libtpu: 0.0.40
codegen_flags: <defaults>
</compile_context>

<pallas_src>
import numbers
from collections.abc import Sequence
from functools import lru_cache, partial

import jax
import jax.numpy as jnp
import numpy as np
from jax.experimental import pallas as pl
from jax.experimental.pallas import tpu as pltpu


# ----------------------------------------------------------------------------
# Static glue: bilinear interpolation weight matrix (half-pixel,
# align_corners=False) matching torch.nn.functional.interpolate
# (mode="bilinear", align_corners=False), i.e. torchvision F.resize on tensors
# with antialias=False/None.
# ----------------------------------------------------------------------------
def _interp_matrix_np(in_size: int, out_size: int) -> np.ndarray:
    scale = in_size / out_size
    dst = np.arange(out_size, dtype=np.float64)
    src = (dst + 0.5) * scale - 0.5
    src = np.maximum(src, 0.0)                        # torch clamps negative coords
    idx0 = np.minimum(np.floor(src).astype(np.int64), in_size - 1)
    idx1 = np.minimum(idx0 + 1, in_size - 1)
    lam = src - idx0                                  # weight for idx1
    m = np.zeros((out_size, in_size), dtype=np.float64)
    rows = np.arange(out_size)
    np.add.at(m, (rows, idx0), 1.0 - lam)
    np.add.at(m, (rows, idx1), lam)
    return m.astype(np.float32)                       # (out_size, in_size)


def _cdiv(a: int, b: int) -> int:
    return -(-a // b)


def _round_up(a: int, b: int) -> int:
    return _cdiv(a, b) * b


@lru_cache(maxsize=64)
def _resize_constants(H: int, W: int, OH: int, OW: int, OH_pad: int, OW_pad: int):
    """Per-channel height matrix (OH_pad, H) and pre-transposed, lane-padded
    width matrix (W, OW_pad), bf16, already resident on device (cached)."""
    mh = np.zeros((OH_pad, H), dtype=np.float32)
    mh[:OH] = _interp_matrix_np(H, OH)                # zero rows pad OH -> OH_pad
    mwt = np.zeros((W, OW_pad), dtype=np.float32)
    mwt[:, :OW] = _interp_matrix_np(W, OW).T          # zero cols pad OW -> OW_pad
    mh_dev = jax.device_put(mh.astype(jnp.bfloat16))
    mwt_dev = jax.device_put(np.ascontiguousarray(mwt).astype(jnp.bfloat16))
    return mh_dev, mwt_dev


# ----------------------------------------------------------------------------
# Pallas kernel: two MXU matmuls per (channel, row-tile) grid step.
# ----------------------------------------------------------------------------
def _resize_kernel(mh_ref, x_ref, mwt_ref, out_ref, *, height_first):
    # Cast the (H, W) channel slab on the VPU (no-op if already bf16); with the
    # common single-row-tile-per-channel grid this happens once per channel.
    x = x_ref[...].astype(jnp.bfloat16)                     # (H, W)
    mh = mh_ref[...]                                        # (row_tile, H) bf16
    mwt = mwt_ref[...]                                      # (W, OW_pad)   bf16
    if height_first:
        t = jnp.dot(mh, x, preferred_element_type=jnp.float32)           # (rt, W)
        out = jnp.dot(t.astype(jnp.bfloat16), mwt,
                      preferred_element_type=jnp.float32)                # (rt, OW_pad)
    else:
        t = jnp.dot(x, mwt, preferred_element_type=jnp.float32)          # (H, OW_pad)
        out = jnp.dot(mh, t.astype(jnp.bfloat16),
                      preferred_element_type=jnp.float32)                # (rt, OW_pad)
    out_ref[...] = out.astype(out_ref.dtype)


def pallas_bilinear_resize(img: jnp.ndarray, size) -> jnp.ndarray:
    """img: (C, H, W) -> (C, out_h, out_w).  Floating dtypes are preserved,
    integer inputs produce float32 output."""
    C, H, W = (int(s) for s in img.shape)
    OH, OW = (int(s) for s in size)

    # Lane-dense output: pad OW to a multiple of 128 (host-side, in MwT).
    OW_pad = OW if OW % 128 == 0 else _round_up(OW, 128)

    # Row tiling of OH: single full tile in the common case (no pad, no slice);
    # multiples of 16 (bf16 sublane pairs) only for very tall outputs.
    MAX_ROW_TILE = 512
    if OH <= MAX_ROW_TILE:
        n_row, row_tile, OH_pad = 1, OH, OH
    else:
        n_row = _cdiv(OH, MAX_ROW_TILE)
        row_tile = _round_up(_cdiv(OH, n_row), 16)
        OH_pad = row_tile * n_row

    mh, mwt = _resize_constants(H, W, OH, OW, OH_pad, OW_pad)

    if jnp.issubdtype(img.dtype, jnp.floating):
        out_dtype = img.dtype
    else:
        out_dtype = jnp.float32
        # TODO(synk): uint8 inputs should be rounded/clamped back to uint8 to
        # match torchvision exactly; we emit float32 instead.

    # Cheaper matmul order (static), accounting for tiling + OW padding.
    cost_h = C * (OH_pad * H * W + OH_pad * W * OW_pad)          # height pass first
    cost_w = C * (n_row * H * W * OW_pad + OH_pad * H * OW_pad)  # width pass first
    height_first = cost_h <= cost_w
    macs = min(cost_h, cost_w)

    itemsize = np.dtype(img.dtype).itemsize
    out_itemsize = np.dtype(out_dtype).itemsize
    bytes_accessed = (C * H * W * itemsize           # image in
                      + OH_pad * H * 2               # Mh
                      + W * OW_pad * 2               # MwT
                      + C * OH_pad * OW_pad * out_itemsize)   # output

    # VMEM budget: double-buffered blocks + intermediate, generation-aware clamp.
    t_rows = row_tile * W if height_first else H * OW_pad
    per_step = (row_tile * H * 2 + H * W * itemsize + W * OW_pad * 2
                + row_tile * OW_pad * out_itemsize)
    vmem_est = 2 * per_step + 2 * t_rows * 4
    try:
        vmem_cap = int(pltpu.get_tpu_info().vmem_capacity_bytes)
    except Exception:
        vmem_cap = 64 << 20                          # conservative (v7x per-TC)
    vmem_limit = int(min(max(vmem_est + (8 << 20), 32 << 20), int(vmem_cap * 0.9)))
    # TODO(synk): frames whose single-channel (H, W) slab exceeds VMEM still need
    # an extra width-tiling pass; only relevant for very large (>4K) inputs.

    out_padded = pl.pallas_call(
        partial(_resize_kernel, height_first=height_first),
        out_shape=jax.ShapeDtypeStruct((C, OH_pad, OW_pad), out_dtype),
        grid=(C, n_row),
        in_specs=[
            pl.BlockSpec((row_tile, H), lambda c, r: (r, 0)),     # Mh row tile (shared)
            pl.BlockSpec((None, H, W), lambda c, r: (c, 0, 0)),   # per-channel image slab
            pl.BlockSpec((W, OW_pad), lambda c, r: (0, 0)),       # MwT (grid-invariant)
        ],
        out_specs=pl.BlockSpec((None, row_tile, OW_pad), lambda c, r: (c, r, 0)),
        compiler_params=pltpu.CompilerParams(
            dimension_semantics=("parallel", "parallel"),
            vmem_limit_bytes=vmem_limit,
        ),
        cost_estimate=pl.CostEstimate(
            flops=2 * macs, transcendentals=0, bytes_accessed=bytes_accessed),
    )(mh, img, mwt)

    if OH_pad != OH or OW_pad != OW:
        out_padded = out_padded[:, :OH, :OW]          # only when padding was applied
    return out_padded


# ----------------------------------------------------------------------------
# resize_boxes: bbox is [xmin, ymin, width, height]; x-coords scale by
# new_w/old_w, y-coords by new_h/old_h.  4 scalars -> plain JAX glue.
# ----------------------------------------------------------------------------
def resize_boxes_jax(boxes, original_size, new_size):
    h, w = original_size
    nh, nw = new_size
    ratio_h = jnp.float32(nh) / jnp.float32(h)
    ratio_w = jnp.float32(nw) / jnp.float32(w)
    scale = jnp.stack([ratio_w, ratio_h, ratio_w, ratio_h]).astype(jnp.float32)
    return boxes.astype(jnp.float32) * scale


# ----------------------------------------------------------------------------
# Module-equivalent wrapper
# ----------------------------------------------------------------------------
class CustomResizePallas:
    def __init__(self, size, max_size=None, antialias=None):
        if isinstance(size, numbers.Number):
            size = (int(size), int(size))
        elif isinstance(size, Sequence) and len(size) == 1:
            size = (int(size[0]), int(size[0]))
        elif len(size) != 2:
            raise ValueError("Please provide only two dimensions (h, w) for size.")
        self.size = tuple(int(s) for s in size)
        self.max_size = max_size
        # TODO(synk): PIL-image inputs, max_size handling and antialias=True
        # (low-pass bilinear) are not implemented (tensor path only).

    def __call__(self, img, bbox):
        if bbox is not None:
            _, h, w = img.shape
            bbox_resized = resize_boxes_jax(bbox, (h, w), self.size)
        else:
            bbox_resized = bbox
        return pallas_bilinear_resize(img, self.size), bbox_resized


# ----------------------------------------------------------------------------
# Pure-JAX f32 reference (same math) for correctness checks.
# ----------------------------------------------------------------------------
def _reference_resize(img, size):
    C, H, W = img.shape
    OH, OW = size
    mh = jnp.asarray(_interp_matrix_np(H, OH))
    mw = jnp.asarray(_interp_matrix_np(W, OW))
    return jnp.einsum("oh,chw,pw->cop", mh, img.astype(jnp.float32), mw)


if __name__ == "__main__":
    key = jax.random.PRNGKey(0)
    k_img, _ = jax.random.split(key)

    C, H, W = 3, 17, 23                    # small, deliberately non-aligned CHW image
    bbox = jnp.array([2.0, 3.0, 10.0, 8.0], dtype=jnp.float32)  # [xmin, ymin, w, h]
    img = jax.random.uniform(k_img, (C, H, W), dtype=jnp.float32)

    # --- downscale -----------------------------------------------------------
    out_size = (10, 14)
    mod = CustomResizePallas(out_size)
    resized_img, resized_bbox = mod(img, bbox)
    resized_img = jax.block_until_ready(resized_img)
    resized_bbox = jax.block_until_ready(resized_bbox)

    assert resized_img.shape == (C, out_size[0], out_size[1])
    assert resized_bbox.shape == (4,)

    ref_img = np.asarray(_reference_resize(img, out_size))
    np.testing.assert_allclose(np.asarray(resized_img, dtype=np.float32),
                               ref_img, rtol=3e-2, atol=3e-2)

    # narrow-dtype path: bf16 in -> bf16 out (dtype-preserving, half the writes)
    out_bf16_in, _ = mod(img.astype(jnp.bfloat16), None)
    out_bf16_in = jax.block_until_ready(out_bf16_in)
    assert out_bf16_in.dtype == jnp.bfloat16
    np.testing.assert_allclose(np.asarray(out_bf16_in, dtype=np.float32),
                               ref_img, rtol=5e-2, atol=5e-2)

    # --- upscale -------------------------------------------------------------
    up_size = (40, 48)
    mod_up = CustomResizePallas(up_size)
    up_img, up_bbox = mod_up(img, bbox)
    up_img = jax.block_until_ready(up_img)
    ref_up = np.asarray(_reference_resize(img, up_size))
    np.testing.assert_allclose(np.asarray(up_img, dtype=np.float32),
                               ref_up, rtol=3e-2, atol=3e-2)

    # --- tall upscale (exercises the multi-row-tile + row/col padding path) --
    tall_size = (520, 30)
    tall_img, _ = CustomResizePallas(tall_size)(img, None)
    tall_img = jax.block_until_ready(tall_img)
    assert tall_img.shape == (C, tall_size[0], tall_size[1])
    ref_tall = np.asarray(_reference_resize(img, tall_size))
    np.testing.assert_allclose(np.asarray(tall_img, dtype=np.float32),
                               ref_tall, rtol=3e-2, atol=3e-2)

    # --- bbox check ----------------------------------------------------------
    ratio_h, ratio_w = out_size[0] / H, out_size[1] / W
    ref_bbox = np.array(
        [2.0 * ratio_w, 3.0 * ratio_h, 10.0 * ratio_w, 8.0 * ratio_h], dtype=np.float32)
    np.testing.assert_allclose(np.asarray(resized_bbox), ref_bbox, rtol=1e-6, atol=1e-6)

    print("KERNEL_OK")
</pallas_src>

<mosaic_0001>
module attributes {stable_mosaic.version = 11 : i64} {
  func.func @_resize_kernel(%arg0: i32, %arg1: i32, %arg2: memref<10x17xbf16, #tpu.memory_space<vmem>>, %arg3: memref<1x17x23xf32, #tpu.memory_space<vmem>>, %arg4: memref<23x128xbf16, #tpu.memory_space<vmem>>, %arg5: memref<1x10x128xf32, #tpu.memory_space<vmem>>) attributes {dimension_semantics = [#tpu.dimension_semantics<parallel>, #tpu.dimension_semantics<parallel>], iteration_bounds = array<i64: 3, 1>, scalar_prefetch = 0 : i64, scratch_operands = 0 : i64, tpu.core_type = #tpu.core_type<tc>, window_params = [{transform_indices = @transform_0, window_bounds = array<i64: 10, 17>}, {transform_indices = @transform_1, window_bounds = array<i64: 1, 17, 23>}, {pipeline_mode = #tpu.pipeline_mode<synchronous>, transform_indices = @transform_2, window_bounds = array<i64: 23, 128>}, {transform_indices = @transform_3, window_bounds = array<i64: 1, 10, 128>}]} {
    %c0 = arith.constant 0 : index
    %c0_0 = arith.constant 0 : index
    %c0_1 = arith.constant 0 : index
    %0 = vector.load %arg3[%c0, %c0_0, %c0_1] : memref<1x17x23xf32, #tpu.memory_space<vmem>>, vector<1x17x23xf32>
    %1 = vector.shape_cast %0 : vector<1x17x23xf32> to vector<17x23xf32>
    %2 = arith.truncf %1 : vector<17x23xf32> to vector<17x23xbf16>
    %c0_2 = arith.constant 0 : index
    %c0_3 = arith.constant 0 : index
    %3 = vector.load %arg2[%c0_2, %c0_3] : memref<10x17xbf16, #tpu.memory_space<vmem>>, vector<10x17xbf16>
    %c0_4 = arith.constant 0 : index
    %c0_5 = arith.constant 0 : index
    %4 = vector.load %arg4[%c0_4, %c0_5] : memref<23x128xbf16, #tpu.memory_space<vmem>>, vector<23x128xbf16>
    %cst = arith.constant dense<0.000000e+00> : vector<10x23xf32>
    %5 = tpu.matmul %3, %2, %cst {dimension_numbers = #tpu.dot_dimension_numbers<[1], [0], [0], [1], [0, 0, 1, 1], [], []>} : vector<10x17xbf16>, vector<17x23xbf16>, vector<10x23xf32> -> vector<10x23xf32>
    %6 = arith.truncf %5 : vector<10x23xf32> to vector<10x23xbf16>
    %cst_6 = arith.constant dense<0.000000e+00> : vector<10x128xf32>
    %7 = tpu.matmul %6, %4, %cst_6 {dimension_numbers = #tpu.dot_dimension_numbers<[1], [0], [0], [1], [0, 0, 1, 1], [], []>} : vector<10x23xbf16>, vector<23x128xbf16>, vector<10x128xf32> -> vector<10x128xf32>
    %c0_7 = arith.constant 0 : index
    %c0_8 = arith.constant 0 : index
    %c0_9 = arith.constant 0 : index
    %8 = vector.load %arg5[%c0_7, %c0_8, %c0_9] : memref<1x10x128xf32, #tpu.memory_space<vmem>>, vector<1x10x128xf32>
    %9 = vector.shape_cast %8 : vector<1x10x128xf32> to vector<10x128xf32>
    %10 = vector.shape_cast %7 : vector<10x128xf32> to vector<1x10x128xf32>
    tpu.vector_store %arg5[%c0_7, %c0_8, %c0_9], %10 {strides = array<i32>} : memref<1x10x128xf32, #tpu.memory_space<vmem>>, vector<1x10x128xf32>,
    return
  }
  func.func @transform_0(%arg0: i32, %arg1: i32) -> (i32, i32) {
    %c0_i32 = arith.constant 0 : i32
    %c0_i32_0 = arith.constant 0 : i32
    return %arg1, %c0_i32 : i32, i32
  }
  func.func @transform_1(%arg0: i32, %arg1: i32) -> (i32, i32, i32) {
    %c0_i32 = arith.constant 0 : i32
    %c0_i32_0 = arith.constant 0 : i32
    %c0_i32_1 = arith.constant 0 : i32
    return %arg0, %c0_i32, %c0_i32_0 : i32, i32, i32
  }
  func.func @transform_2(%arg0: i32, %arg1: i32) -> (i32, i32) {
    %c0_i32 = arith.constant 0 : i32
    %c0_i32_0 = arith.constant 0 : i32
    %c0_i32_1 = arith.constant 0 : i32
    return %c0_i32, %c0_i32_0 : i32, i32
  }
  func.func @transform_3(%arg0: i32, %arg1: i32) -> (i32, i32, i32) {
    %c0_i32 = arith.constant 0 : i32
    %c0_i32_0 = arith.constant 0 : i32
    return %arg0, %arg1, %c0_i32 : i32, i32, i32
  }
}

</mosaic_0001>

<bundles_post_ra>
// kernel: tpu_custom_call.1
= control target key start
LH: loop header
LB: loop body
LE: loop exit
PB: predicated region body
PF: predicated region fallthrough
CT: control target
= control target key end

     0   :  { %s486_s12 = smov 0   ;;  %s488_s13 = smov 0   ;;  %s535_s0 = inlined_call_operand.vmem [shape: bf16[10,17], index: 0, kind: input, shape index: {}]   ;;  %s536_s1 = inlined_call_operand.vmem [shape: f32[3,17,23], index: 1, kind: input, shape index: {}]   ;;  %s537_s2 = inlined_call_operand.vmem [shape: bf16[23,128], index: 2, kind: input, shape index: {}]   ;;  %s538_s3 = inlined_call_operand.vmem [shape: f32[3,10,128], index: 3, kind: output, shape index: {}]  }
   0x1   :  { %s490_s14 = smov 0  }
   0x2 LB: > { %s25_s15 = sadd.s32 1, %s458_s13  ;;  %p394_p0 = scmp.ge.s32.totalorder %s462_s14, 1  ;;  %s462_s14 = sphi %s490_s14, %s13_s14   ;;  %s458_s13 = sphi %s488_s13, %s540_s13   ;;  %s454_s12 = sphi %s486_s12, %s539_s12  }
   0x3   : > { %p27_p1 = scmp.ge.s32.totalorder %s25_s15, 3  ;;  %p162_p2 = scmp.lt.s32.totalorder %s462_s14, 4 }
   0x5   : > { %s542_s15 = smov (%p27_p1, %s25_s15), 0  ;;  %p163_p3 = pnand %p394_p0, %p162_p2 }
   0x6   : > { %p201_p4 = scmp.lt.s32.totalorder (!%p163_p3), %s454_s12, 2 }
   0x7   : > { %166 = sbr.rel (%p163_p3) target bundleno = 299 (0x12b), region = 32 }
   0xc   : > { %s544_s12 = smov (!%p201_p4, %s454_s12), 2  ;;  %vm236_vm0 = vcmask 1040384   ;;  %v464_v1 = vmov 0   ;;  %v400_v8 = vld [vmem:[%s535_s0] sm:$0xf]  ;;  %vm232_vm1 = vcmask 138240  }
   0xd   : > { %s413_s16 = smul.u32 24, %s544_s12  ;;  %v238_v2 = vsel %vm236_vm0, 65535, %v464_v1  ;;  %v411_v9 = vld [vmem:[%s535_s0] sm:$0x10]  ;;  %v226_v11 = vld [vmem:[%s537_s2 + $0x8] sm:$0xf] }
   0xe   : > { %v401_v10 = vor.u32 %v411_v9, %v400_v8  ;;  %v262_v12 = vunpack.c.l.b16 %v226_v11  ;;  %vm270_vm2 = vcmask 1042432   ;;  %vm271_vm3 = vcmask 1043456   ;;  %v412_v18 = vld [vmem:[%s537_s2] sm:$0xff]  ;;  %s410_s28 = sshll.u32 %s544_s12, 4 }
   0xf   : > { %s205_s19 = scalar_lea.vmem %s536_s1, %s413_s16  ;;  %v465_v14 = vmov 65535   ;;  %vm266_vm4 = vcmask 187392   ;;  %s214_s4 = scalar_lea.vmem %s538_s3, %s410_s28 }
  0x10   : > { %v219_v0 = vld [vmem:[%s205_s19 + $0x10] sm:$0x1]  ;;  %v217_v4 = vld [vmem:[%s205_s19] sm:$0xff]  ;;  %v218_v5 = vld [vmem:[%s205_s19 + $0x8] sm:$0xff]  ;;  %v264_v13 = vpack.c.b16 %v262_v12, %v262_v12  ;;  %v272_v15 = vsel %vm270_vm2, 4294967295, %v465_v14 }
  0x11   : > { %v221_v3 = vpack.c.bf16 %v219_v0, %v219_v0  ;;  %v220_v7 = vpack.c.bf16 %v218_v5, %v217_v4  ;;  %v273_v16 = vsel %vm271_vm3, %v272_v15, 0 }
  0x12   : > { %v275_v17 = vand.u32 %v273_v16, %v264_v13 }
  0x13   : > { %v240_v6 = vand.u32 %v238_v2, %v221_v3 }
  0x14   : > { %283 = vmatpush.bf16.msra.mxu1 %v275_v17 }
  0x15   : > { %248 = vmatpush.bf16.msra.mxu0 %v240_v6 }
  0x18   : > { %284 = vmatpush.bf16.msra.mxu1 %v412_v18 }
  0x19   : > { %249 = vmatpush.bf16.msra.mxu0 %v220_v7 }
  0x1c   : > { %402 = vmatmul.msk.bf16.vlgmr.msra.gmra.mxu0 %vm232_vm1, %v401_v10 }
  0x99   : > { %v251_v19 = vpop.f32.mrf.mxu0 }
  0xa1   : > { %v253_v20 = vpop.f32.mrf.mxu0 }
  0xa2   : > { %v256_v21 = vpack.c.bf16 %v253_v20, %v251_v19 }
  0xa4   : > { %407 = vmatmul.msk.bf16.vlgmr.msra.gmra.mxu1 %vm266_vm4, %v256_v21 }
 0x121   : > { %v286_v22 = vpop.f32.mrf.mxu1 }
 0x122   : > { %291 = vst [vmem:[%s214_s4] sm:$0xff] %v286_v22 }
 0x129   : > { %v288_v23 = vpop.f32.mrf.mxu1 }
 0x12a   : > { %292 = vst [vmem:[%s214_s4 + $0x8] sm:$0x3] %v288_v23 }
 0x12b PF: > { %s13_s14 = sadd.s32 1, %s462_s14   ;;  %s539_s12 = smov %s458_s13 }
 0x12c   : > { %p10_p5 = scmp.ge.s32.totalorder %s13_s14, 5   ;;  %s540_s13 = smov %s542_s15 }
 0x12e   :  { %12 = sbr.rel (!%p10_p5) target bundleno = 2 (0x2), region = 65 }

</bundles_post_ra>
